<compile_context>
chip_gen: v5e
topology: v5e:2x2
jax: 0.10.0
libtpu: 0.0.40
codegen_flags: <defaults>
</compile_context>

<pallas_src>
import jax
import jax.numpy as jnp
from jax.experimental import pallas as pl
from jax.experimental.pallas import tpu as pltpu

GAMMA = 2          # focal exponent (default of the PyTorch module); == 2 -> explicit mul below
EPS = 1e-7         # kept for parity; the PyTorch forward never actually uses it
NUM_TAGS = 4       # CRF(4, batch_first=True)


def crf_focal_kernel(em_ref, tags_ref, trans_ref, start_ref, end_ref,
                     out_ref, acc_ref):
    S, T, B = em_ref.shape          # layout: (seq, tags, batch_tile)  -- B on lanes
    em = em_ref[...]                # (S, T, B) f32
    tags = tags_ref[...]            # (S, B)    int32
    trans = trans_ref[...]          # (T, T)
    start = start_ref[...]          # (T, 1)
    end = end_ref[...]              # (T, 1)

    # One-hot built in-kernel (tags arrive as int32 -> 4x fewer input bytes).
    tag_iota = jax.lax.broadcasted_iota(jnp.int32, (S, T, B), 1)
    oh = (tag_iota == tags[:, None, :]).astype(jnp.float32)                # (S, T, B)

    # ---------------- numerator: gold-path score, (1, B) ----------------
    emit_sc = jnp.sum(jnp.sum(oh * em, axis=0), axis=0, keepdims=True)     # (1, B)

    prev = oh[:-1]                  # (S-1, T, B)
    nxt = oh[1:]                    # (S-1, T, B)
    # m[t, i, b] = sum_j trans[i, j] * nxt[t, j, b]; unrolled over T=4 -> pure VPU,
    # no rank-4 outer product, no MXU.
    m = jnp.zeros((S - 1, T, B), jnp.float32)
    for j in range(T):
        m = m + trans[None, :, j:j + 1] * nxt[:, j:j + 1, :]
    trans_sc = jnp.sum(jnp.sum(prev * m, axis=0), axis=0, keepdims=True)   # (1, B)

    start_sc = jnp.sum(start * oh[0], axis=0, keepdims=True)               # (1, B)
    end_sc = jnp.sum(end * oh[S - 1], axis=0, keepdims=True)               # (1, B)
    numerator = emit_sc + trans_sc + start_sc + end_sc                     # (1, B)

    # ---------------- denominator: forward algorithm (log-partition) -----------
    # alpha is (T, B): T=4 on sublanes, batch on lanes; per-step logsumexp over
    # T_prev reduces the leading axis of a (T, T, B) broadcast -> VPU adds/maxes.
    alpha0 = start + em[0]                                                 # (T, B)

    def step(t, alpha):
        e_t = em_ref[t]                                                    # (T, B)
        scores = alpha[:, None, :] + trans[:, :, None] + e_t[None, :, :]   # (Tp, Tn, B)
        mx = jnp.max(scores, axis=0)                                       # (Tn, B)
        return mx + jnp.log(jnp.sum(jnp.exp(scores - mx[None, :, :]), axis=0))

    alpha = jax.lax.fori_loop(1, S, step, alpha0, unroll=True)

    final = alpha + end                                                    # (T, B)
    mx = jnp.max(final, axis=0, keepdims=True)                             # (1, B)
    denom = mx + jnp.log(jnp.sum(jnp.exp(final - mx), axis=0, keepdims=True))  # (1, B)

    # ---------------- accumulate llh over batch tiles, finalize once ----------
    i = pl.program_id(0)

    @pl.when(i == 0)
    def _():
        acc_ref[...] = jnp.zeros_like(acc_ref)

    acc_ref[...] += jnp.sum(numerator - denom, axis=1, keepdims=True)      # (1, 1)

    @pl.when(i == pl.num_programs(0) - 1)
    def _():
        llh = acc_ref[...]          # CRF forward with reduction='sum'
        logp = -llh
        p = jnp.exp(llh)            # exp(-logp)
        omp = 1.0 - p
        out_ref[...] = omp * omp * logp   # gamma=2 -> explicit multiply, no pow


def _choose_batch_tile(B, S, T):
    # Lane axis must be a multiple of 128 or the full extent.  Keep each
    # (double-buffered) input buffer small enough for v7x's 64 MiB VMEM.
    if B % 128 != 0:
        return B
    budget_bytes = 8 * 1024 * 1024
    bt = max(128, min(B, (budget_bytes // (S * T * 4)) // 128 * 128))
    while B % bt != 0:
        bt -= 128
    return bt


def crf_focal_loss(emissions, tags, transitions, start_trans, end_trans):
    B, S, T = emissions.shape
    # Re-layout so batch sits on the lane axis inside the kernel.
    em_stb = jnp.transpose(emissions.astype(jnp.float32), (1, 2, 0))       # (S, T, B)
    tags_sb = jnp.transpose(tags.astype(jnp.int32), (1, 0))                # (S, B)
    trans = transitions.astype(jnp.float32)                                # (T, T)
    start = start_trans.reshape(T, 1).astype(jnp.float32)                  # (T, 1)
    end = end_trans.reshape(T, 1).astype(jnp.float32)                      # (T, 1)

    b_tile = _choose_batch_tile(B, S, T)
    grid = (B // b_tile,)

    out = pl.pallas_call(
        crf_focal_kernel,
        out_shape=jax.ShapeDtypeStruct((1, 1), jnp.float32),
        grid_spec=pltpu.PrefetchScalarGridSpec(
            num_scalar_prefetch=0,
            grid=grid,
            in_specs=[
                pl.BlockSpec((S, T, b_tile), lambda i: (0, 0, i)),
                pl.BlockSpec((S, b_tile), lambda i: (0, i)),
                pl.BlockSpec((T, T), lambda i: (0, 0)),
                pl.BlockSpec((T, 1), lambda i: (0, 0)),
                pl.BlockSpec((T, 1), lambda i: (0, 0)),
            ],
            out_specs=pl.BlockSpec((1, 1), lambda i: (0, 0)),
            scratch_shapes=[pltpu.VMEM((1, 1), jnp.float32)],
        ),
        compiler_params=pltpu.CompilerParams(
            # Batch axis accumulates into a single scalar -> must stay "arbitrary".
            # TODO(synk): for v7x, emit per-block partial llh and reduce outside to
            # let the two TensorCores split the batch.
            dimension_semantics=("arbitrary",),
            vmem_limit_bytes=32 * 1024 * 1024,
        ),
    )(em_stb, tags_sb, trans, start, end)
    return out[0, 0]


def reference_loss(emissions, tags, transitions, start_trans, end_trans):
    """Pure-JAX reference (same math as torchcrf + focal wrapper)."""
    B, S, T = emissions.shape
    oh = jax.nn.one_hot(tags, T, dtype=jnp.float32)
    emit_sc = jnp.sum(oh * emissions, axis=-1).sum(-1)
    pair = oh[:, :-1, :, None] * oh[:, 1:, None, :]
    trans_sc = jnp.sum(pair * transitions[None, None], axis=(-1, -2)).sum(-1)
    start_sc = jnp.sum(oh[:, 0, :] * start_trans[None, :], axis=-1)
    end_sc = jnp.sum(oh[:, -1, :] * end_trans[None, :], axis=-1)
    numerator = emit_sc + trans_sc + start_sc + end_sc

    alpha = start_trans[None, :] + emissions[:, 0, :]
    for t in range(1, S):
        scores = alpha[:, :, None] + transitions[None] + emissions[:, t, None, :]
        alpha = jax.nn.logsumexp(scores, axis=1)
    denom = jax.nn.logsumexp(alpha + end_trans[None, :], axis=-1)

    llh = jnp.sum(numerator - denom)
    logp = -llh
    p = jnp.exp(-logp)
    return (1.0 - p) ** GAMMA * logp


if __name__ == "__main__":
    key = jax.random.PRNGKey(0)
    k_em, k_tag, k_tr, k_st, k_en = jax.random.split(key, 5)

    B, S, T = 2, 8, NUM_TAGS
    emissions = jax.random.normal(k_em, (B, S, T), dtype=jnp.float32)
    tags = jax.random.randint(k_tag, (B, S), 0, T)
    # torchcrf init: uniform(-0.1, 0.1) for all CRF parameters
    transitions = jax.random.uniform(k_tr, (T, T), jnp.float32, -0.1, 0.1)
    start_trans = jax.random.uniform(k_st, (T,), jnp.float32, -0.1, 0.1)
    end_trans = jax.random.uniform(k_en, (T,), jnp.float32, -0.1, 0.1)

    loss = crf_focal_loss(emissions, tags, transitions, start_trans, end_trans)
    loss = jax.block_until_ready(loss)

    ref = reference_loss(emissions, tags, transitions, start_trans, end_trans)
    assert abs(float(loss) - float(ref)) < 1e-3, (float(loss), float(ref))

    print("KERNEL_OK")
</pallas_src>

<mosaic_0001>
module attributes {stable_mosaic.version = 11 : i64} {
  func.func @crf_focal_kernel(%arg0: i32, %arg1: memref<8x4x2xf32, #tpu.memory_space<vmem>>, %arg2: memref<8x2xi32, #tpu.memory_space<vmem>>, %arg3: memref<4x4xf32, #tpu.memory_space<vmem>>, %arg4: memref<4x1xf32, #tpu.memory_space<vmem>>, %arg5: memref<4x1xf32, #tpu.memory_space<vmem>>, %arg6: memref<1x1xf32, #tpu.memory_space<vmem>>, %arg7: memref<1x1xf32, #tpu.memory_space<vmem>>) attributes {dimension_semantics = [#tpu.dimension_semantics<arbitrary>], iteration_bounds = array<i64: 1>, scalar_prefetch = 0 : i64, scratch_operands = 1 : i64, tpu.core_type = #tpu.core_type<tc>, window_params = [{transform_indices = @transform_0, window_bounds = array<i64: 8, 4, 2>}, {transform_indices = @transform_1, window_bounds = array<i64: 8, 2>}, {pipeline_mode = #tpu.pipeline_mode<synchronous>, transform_indices = @transform_2, window_bounds = array<i64: 4, 4>}, {pipeline_mode = #tpu.pipeline_mode<synchronous>, transform_indices = @transform_3, window_bounds = array<i64: 4, 1>}, {pipeline_mode = #tpu.pipeline_mode<synchronous>, transform_indices = @transform_4, window_bounds = array<i64: 4, 1>}, {pipeline_mode = #tpu.pipeline_mode<synchronous>, transform_indices = @transform_5, window_bounds = array<i64: 1, 1>}]} {
    %c0 = arith.constant 0 : index
    %c0_0 = arith.constant 0 : index
    %c0_1 = arith.constant 0 : index
    %0 = vector.load %arg1[%c0, %c0_0, %c0_1] : memref<8x4x2xf32, #tpu.memory_space<vmem>>, vector<8x4x2xf32>
    %c0_2 = arith.constant 0 : index
    %c0_3 = arith.constant 0 : index
    %1 = vector.load %arg2[%c0_2, %c0_3] : memref<8x2xi32, #tpu.memory_space<vmem>>, vector<8x2xi32>
    %c0_4 = arith.constant 0 : index
    %c0_5 = arith.constant 0 : index
    %2 = vector.load %arg3[%c0_4, %c0_5] : memref<4x4xf32, #tpu.memory_space<vmem>>, vector<4x4xf32>
    %c0_6 = arith.constant 0 : index
    %c0_7 = arith.constant 0 : index
    %3 = vector.load %arg4[%c0_6, %c0_7] : memref<4x1xf32, #tpu.memory_space<vmem>>, vector<4x1xf32>
    %c0_8 = arith.constant 0 : index
    %c0_9 = arith.constant 0 : index
    %4 = vector.load %arg5[%c0_8, %c0_9] : memref<4x1xf32, #tpu.memory_space<vmem>>, vector<4x1xf32>
    %5 = tpu.iota {dimensions = array<i32: 1>} : vector<8x4x2xi32>
    %6 = vector.shape_cast %1 : vector<8x2xi32> to vector<8x1x2xi32>
    %7 = vector.broadcast %6 : vector<8x1x2xi32> to vector<8x4x2xi32>
    %8 = arith.cmpi eq, %5, %7 : vector<8x4x2xi32>
    %9 = arith.extui %8 : vector<8x4x2xi1> to vector<8x4x2xi32>
    %10 = arith.sitofp %9 : vector<8x4x2xi32> to vector<8x4x2xf32>
    %11 = arith.mulf %10, %0 : vector<8x4x2xf32>
    %cst = arith.constant dense<0.000000e+00> : vector<4x2xf32>
    %12 = vector.multi_reduction <add>, %11, %cst [0] : vector<8x4x2xf32> to vector<4x2xf32>
    %cst_10 = arith.constant dense<0.000000e+00> : vector<2xf32>
    %13 = vector.multi_reduction <add>, %12, %cst_10 [0] : vector<4x2xf32> to vector<2xf32>
    %14 = vector.shape_cast %13 : vector<2xf32> to vector<1x2xf32>
    %15 = vector.extract_strided_slice %10 {offsets = [0, 0, 0], sizes = [7, 4, 2], strides = [1, 1, 1]} : vector<8x4x2xf32> to vector<7x4x2xf32>
    %16 = vector.extract_strided_slice %10 {offsets = [1, 0, 0], sizes = [7, 4, 2], strides = [1, 1, 1]} : vector<8x4x2xf32> to vector<7x4x2xf32>
    %cst_11 = arith.constant 0.000000e+00 : f32
    %17 = vector.broadcast %cst_11 : f32 to vector<7x4x2xf32>
    %18 = vector.extract_strided_slice %2 {offsets = [0, 0], sizes = [4, 1], strides = [1, 1]} : vector<4x4xf32> to vector<4x1xf32>
    %19 = vector.shape_cast %18 : vector<4x1xf32> to vector<1x4x1xf32>
    %20 = vector.extract_strided_slice %16 {offsets = [0, 0, 0], sizes = [7, 1, 2], strides = [1, 1, 1]} : vector<7x4x2xf32> to vector<7x1x2xf32>
    %21 = vector.broadcast %19 : vector<1x4x1xf32> to vector<7x4x2xf32>
    %22 = vector.broadcast %20 : vector<7x1x2xf32> to vector<7x4x2xf32>
    %23 = arith.mulf %21, %22 : vector<7x4x2xf32>
    %24 = arith.addf %17, %23 : vector<7x4x2xf32>
    %25 = vector.extract_strided_slice %2 {offsets = [0, 1], sizes = [4, 1], strides = [1, 1]} : vector<4x4xf32> to vector<4x1xf32>
    %26 = vector.shape_cast %25 : vector<4x1xf32> to vector<1x4x1xf32>
    %27 = vector.extract_strided_slice %16 {offsets = [0, 1, 0], sizes = [7, 1, 2], strides = [1, 1, 1]} : vector<7x4x2xf32> to vector<7x1x2xf32>
    %28 = vector.broadcast %26 : vector<1x4x1xf32> to vector<7x4x2xf32>
    %29 = vector.broadcast %27 : vector<7x1x2xf32> to vector<7x4x2xf32>
    %30 = arith.mulf %28, %29 : vector<7x4x2xf32>
    %31 = arith.addf %24, %30 : vector<7x4x2xf32>
    %32 = vector.extract_strided_slice %2 {offsets = [0, 2], sizes = [4, 1], strides = [1, 1]} : vector<4x4xf32> to vector<4x1xf32>
    %33 = vector.shape_cast %32 : vector<4x1xf32> to vector<1x4x1xf32>
    %34 = vector.extract_strided_slice %16 {offsets = [0, 2, 0], sizes = [7, 1, 2], strides = [1, 1, 1]} : vector<7x4x2xf32> to vector<7x1x2xf32>
    %35 = vector.broadcast %33 : vector<1x4x1xf32> to vector<7x4x2xf32>
    %36 = vector.broadcast %34 : vector<7x1x2xf32> to vector<7x4x2xf32>
    %37 = arith.mulf %35, %36 : vector<7x4x2xf32>
    %38 = arith.addf %31, %37 : vector<7x4x2xf32>
    %39 = vector.extract_strided_slice %2 {offsets = [0, 3], sizes = [4, 1], strides = [1, 1]} : vector<4x4xf32> to vector<4x1xf32>
    %40 = vector.shape_cast %39 : vector<4x1xf32> to vector<1x4x1xf32>
    %41 = vector.extract_strided_slice %16 {offsets = [0, 3, 0], sizes = [7, 1, 2], strides = [1, 1, 1]} : vector<7x4x2xf32> to vector<7x1x2xf32>
    %42 = vector.broadcast %40 : vector<1x4x1xf32> to vector<7x4x2xf32>
    %43 = vector.broadcast %41 : vector<7x1x2xf32> to vector<7x4x2xf32>
    %44 = arith.mulf %42, %43 : vector<7x4x2xf32>
    %45 = arith.addf %38, %44 : vector<7x4x2xf32>
    %46 = arith.mulf %15, %45 : vector<7x4x2xf32>
    %cst_12 = arith.constant dense<0.000000e+00> : vector<4x2xf32>
    %47 = vector.multi_reduction <add>, %46, %cst_12 [0] : vector<7x4x2xf32> to vector<4x2xf32>
    %cst_13 = arith.constant dense<0.000000e+00> : vector<2xf32>
    %48 = vector.multi_reduction <add>, %47, %cst_13 [0] : vector<4x2xf32> to vector<2xf32>
    %49 = vector.shape_cast %48 : vector<2xf32> to vector<1x2xf32>
    %50 = vector.extract_strided_slice %10 {offsets = [0, 0, 0], sizes = [1, 4, 2], strides = [1, 1, 1]} : vector<8x4x2xf32> to vector<1x4x2xf32>
    %51 = vector.shape_cast %50 : vector<1x4x2xf32> to vector<4x2xf32>
    %52 = vector.broadcast %3 : vector<4x1xf32> to vector<4x2xf32>
    %53 = arith.mulf %52, %51 : vector<4x2xf32>
    %cst_14 = arith.constant dense<0.000000e+00> : vector<2xf32>
    %54 = vector.multi_reduction <add>, %53, %cst_14 [0] : vector<4x2xf32> to vector<2xf32>
    %55 = vector.shape_cast %54 : vector<2xf32> to vector<1x2xf32>
    %56 = vector.extract_strided_slice %10 {offsets = [7, 0, 0], sizes = [1, 4, 2], strides = [1, 1, 1]} : vector<8x4x2xf32> to vector<1x4x2xf32>
    %57 = vector.shape_cast %56 : vector<1x4x2xf32> to vector<4x2xf32>
    %58 = vector.broadcast %4 : vector<4x1xf32> to vector<4x2xf32>
    %59 = arith.mulf %58, %57 : vector<4x2xf32>
    %cst_15 = arith.constant dense<0.000000e+00> : vector<2xf32>
    %60 = vector.multi_reduction <add>, %59, %cst_15 [0] : vector<4x2xf32> to vector<2xf32>
    %61 = vector.shape_cast %60 : vector<2xf32> to vector<1x2xf32>
    %62 = arith.addf %14, %49 : vector<1x2xf32>
    %63 = arith.addf %62, %55 : vector<1x2xf32>
    %64 = arith.addf %63, %61 : vector<1x2xf32>
    %65 = vector.extract_strided_slice %0 {offsets = [0, 0, 0], sizes = [1, 4, 2], strides = [1, 1, 1]} : vector<8x4x2xf32> to vector<1x4x2xf32>
    %66 = vector.shape_cast %65 : vector<1x4x2xf32> to vector<4x2xf32>
    %67 = vector.broadcast %3 : vector<4x1xf32> to vector<4x2xf32>
    %68 = arith.addf %67, %66 : vector<4x2xf32>
    %c1_i32 = arith.constant 1 : i32
    %69 = arith.index_cast %c1_i32 : i32 to index
    %c0_16 = arith.constant 0 : index
    %c0_17 = arith.constant 0 : index
    %70 = vector.load %arg1[%69, %c0_16, %c0_17] : memref<8x4x2xf32, #tpu.memory_space<vmem>>, vector<1x4x2xf32>
    %71 = vector.shape_cast %70 : vector<1x4x2xf32> to vector<4x2xf32>
    %72 = vector.shape_cast %68 : vector<4x2xf32> to vector<4x1x2xf32>
    %73 = vector.shape_cast %2 : vector<4x4xf32> to vector<4x4x1xf32>
    %74 = vector.broadcast %72 : vector<4x1x2xf32> to vector<4x4x2xf32>
    %75 = vector.broadcast %73 : vector<4x4x1xf32> to vector<4x4x2xf32>
    %76 = arith.addf %74, %75 : vector<4x4x2xf32>
    %77 = vector.shape_cast %71 : vector<4x2xf32> to vector<1x4x2xf32>
    %78 = vector.broadcast %77 : vector<1x4x2xf32> to vector<4x4x2xf32>
    %79 = arith.addf %76, %78 : vector<4x4x2xf32>
    %cst_18 = arith.constant dense<0xFF800000> : vector<4x2xf32>
    %80 = vector.multi_reduction <maximumf>, %79, %cst_18 [0] : vector<4x4x2xf32> to vector<4x2xf32>
    %81 = vector.shape_cast %80 : vector<4x2xf32> to vector<1x4x2xf32>
    %82 = vector.broadcast %81 : vector<1x4x2xf32> to vector<4x4x2xf32>
    %83 = arith.subf %79, %82 : vector<4x4x2xf32>
    %84 = math.exp %83 : vector<4x4x2xf32>
    %cst_19 = arith.constant dense<0.000000e+00> : vector<4x2xf32>
    %85 = vector.multi_reduction <add>, %84, %cst_19 [0] : vector<4x4x2xf32> to vector<4x2xf32>
    %86 = math.log %85 : vector<4x2xf32>
    %87 = arith.addf %80, %86 : vector<4x2xf32>
    %c2_i32 = arith.constant 2 : i32
    %88 = arith.index_cast %c2_i32 : i32 to index
    %c0_20 = arith.constant 0 : index
    %c0_21 = arith.constant 0 : index
    %89 = vector.load %arg1[%88, %c0_20, %c0_21] : memref<8x4x2xf32, #tpu.memory_space<vmem>>, vector<1x4x2xf32>
    %90 = vector.shape_cast %89 : vector<1x4x2xf32> to vector<4x2xf32>
    %91 = vector.shape_cast %87 : vector<4x2xf32> to vector<4x1x2xf32>
    %92 = vector.shape_cast %2 : vector<4x4xf32> to vector<4x4x1xf32>
    %93 = vector.broadcast %91 : vector<4x1x2xf32> to vector<4x4x2xf32>
    %94 = vector.broadcast %92 : vector<4x4x1xf32> to vector<4x4x2xf32>
    %95 = arith.addf %93, %94 : vector<4x4x2xf32>
    %96 = vector.shape_cast %90 : vector<4x2xf32> to vector<1x4x2xf32>
    %97 = vector.broadcast %96 : vector<1x4x2xf32> to vector<4x4x2xf32>
    %98 = arith.addf %95, %97 : vector<4x4x2xf32>
    %cst_22 = arith.constant dense<0xFF800000> : vector<4x2xf32>
    %99 = vector.multi_reduction <maximumf>, %98, %cst_22 [0] : vector<4x4x2xf32> to vector<4x2xf32>
    %100 = vector.shape_cast %99 : vector<4x2xf32> to vector<1x4x2xf32>
    %101 = vector.broadcast %100 : vector<1x4x2xf32> to vector<4x4x2xf32>
    %102 = arith.subf %98, %101 : vector<4x4x2xf32>
    %103 = math.exp %102 : vector<4x4x2xf32>
    %cst_23 = arith.constant dense<0.000000e+00> : vector<4x2xf32>
    %104 = vector.multi_reduction <add>, %103, %cst_23 [0] : vector<4x4x2xf32> to vector<4x2xf32>
    %105 = math.log %104 : vector<4x2xf32>
    %106 = arith.addf %99, %105 : vector<4x2xf32>
    %c3_i32 = arith.constant 3 : i32
    %107 = arith.index_cast %c3_i32 : i32 to index
    %c0_24 = arith.constant 0 : index
    %c0_25 = arith.constant 0 : index
    %108 = vector.load %arg1[%107, %c0_24, %c0_25] : memref<8x4x2xf32, #tpu.memory_space<vmem>>, vector<1x4x2xf32>
    %109 = vector.shape_cast %108 : vector<1x4x2xf32> to vector<4x2xf32>
    %110 = vector.shape_cast %106 : vector<4x2xf32> to vector<4x1x2xf32>
    %111 = vector.shape_cast %2 : vector<4x4xf32> to vector<4x4x1xf32>
    %112 = vector.broadcast %110 : vector<4x1x2xf32> to vector<4x4x2xf32>
    %113 = vector.broadcast %111 : vector<4x4x1xf32> to vector<4x4x2xf32>
    %114 = arith.addf %112, %113 : vector<4x4x2xf32>
    %115 = vector.shape_cast %109 : vector<4x2xf32> to vector<1x4x2xf32>
    %116 = vector.broadcast %115 : vector<1x4x2xf32> to vector<4x4x2xf32>
    %117 = arith.addf %114, %116 : vector<4x4x2xf32>
    %cst_26 = arith.constant dense<0xFF800000> : vector<4x2xf32>
    %118 = vector.multi_reduction <maximumf>, %117, %cst_26 [0] : vector<4x4x2xf32> to vector<4x2xf32>
    %119 = vector.shape_cast %118 : vector<4x2xf32> to vector<1x4x2xf32>
    %120 = vector.broadcast %119 : vector<1x4x2xf32> to vector<4x4x2xf32>
    %121 = arith.subf %117, %120 : vector<4x4x2xf32>
    %122 = math.exp %121 : vector<4x4x2xf32>
    %cst_27 = arith.constant dense<0.000000e+00> : vector<4x2xf32>
    %123 = vector.multi_reduction <add>, %122, %cst_27 [0] : vector<4x4x2xf32> to vector<4x2xf32>
    %124 = math.log %123 : vector<4x2xf32>
    %125 = arith.addf %118, %124 : vector<4x2xf32>
    %c4_i32 = arith.constant 4 : i32
    %126 = arith.index_cast %c4_i32 : i32 to index
    %c0_28 = arith.constant 0 : index
    %c0_29 = arith.constant 0 : index
    %127 = vector.load %arg1[%126, %c0_28, %c0_29] : memref<8x4x2xf32, #tpu.memory_space<vmem>>, vector<1x4x2xf32>
    %128 = vector.shape_cast %127 : vector<1x4x2xf32> to vector<4x2xf32>
    %129 = vector.shape_cast %125 : vector<4x2xf32> to vector<4x1x2xf32>
    %130 = vector.shape_cast %2 : vector<4x4xf32> to vector<4x4x1xf32>
    %131 = vector.broadcast %129 : vector<4x1x2xf32> to vector<4x4x2xf32>
    %132 = vector.broadcast %130 : vector<4x4x1xf32> to vector<4x4x2xf32>
    %133 = arith.addf %131, %132 : vector<4x4x2xf32>
    %134 = vector.shape_cast %128 : vector<4x2xf32> to vector<1x4x2xf32>
    %135 = vector.broadcast %134 : vector<1x4x2xf32> to vector<4x4x2xf32>
    %136 = arith.addf %133, %135 : vector<4x4x2xf32>
    %cst_30 = arith.constant dense<0xFF800000> : vector<4x2xf32>
    %137 = vector.multi_reduction <maximumf>, %136, %cst_30 [0] : vector<4x4x2xf32> to vector<4x2xf32>
    %138 = vector.shape_cast %137 : vector<4x2xf32> to vector<1x4x2xf32>
    %139 = vector.broadcast %138 : vector<1x4x2xf32> to vector<4x4x2xf32>
    %140 = arith.subf %136, %139 : vector<4x4x2xf32>
    %141 = math.exp %140 : vector<4x4x2xf32>
    %cst_31 = arith.constant dense<0.000000e+00> : vector<4x2xf32>
    %142 = vector.multi_reduction <add>, %141, %cst_31 [0] : vector<4x4x2xf32> to vector<4x2xf32>
    %143 = math.log %142 : vector<4x2xf32>
    %144 = arith.addf %137, %143 : vector<4x2xf32>
    %c5_i32 = arith.constant 5 : i32
    %145 = arith.index_cast %c5_i32 : i32 to index
    %c0_32 = arith.constant 0 : index
    %c0_33 = arith.constant 0 : index
    %146 = vector.load %arg1[%145, %c0_32, %c0_33] : memref<8x4x2xf32, #tpu.memory_space<vmem>>, vector<1x4x2xf32>
    %147 = vector.shape_cast %146 : vector<1x4x2xf32> to vector<4x2xf32>
    %148 = vector.shape_cast %144 : vector<4x2xf32> to vector<4x1x2xf32>
    %149 = vector.shape_cast %2 : vector<4x4xf32> to vector<4x4x1xf32>
    %150 = vector.broadcast %148 : vector<4x1x2xf32> to vector<4x4x2xf32>
    %151 = vector.broadcast %149 : vector<4x4x1xf32> to vector<4x4x2xf32>
    %152 = arith.addf %150, %151 : vector<4x4x2xf32>
    %153 = vector.shape_cast %147 : vector<4x2xf32> to vector<1x4x2xf32>
    %154 = vector.broadcast %153 : vector<1x4x2xf32> to vector<4x4x2xf32>
    %155 = arith.addf %152, %154 : vector<4x4x2xf32>
    %cst_34 = arith.constant dense<0xFF800000> : vector<4x2xf32>
    %156 = vector.multi_reduction <maximumf>, %155, %cst_34 [0] : vector<4x4x2xf32> to vector<4x2xf32>
    %157 = vector.shape_cast %156 : vector<4x2xf32> to vector<1x4x2xf32>
    %158 = vector.broadcast %157 : vector<1x4x2xf32> to vector<4x4x2xf32>
    %159 = arith.subf %155, %158 : vector<4x4x2xf32>
    %160 = math.exp %159 : vector<4x4x2xf32>
    %cst_35 = arith.constant dense<0.000000e+00> : vector<4x2xf32>
    %161 = vector.multi_reduction <add>, %160, %cst_35 [0] : vector<4x4x2xf32> to vector<4x2xf32>
    %162 = math.log %161 : vector<4x2xf32>
    %163 = arith.addf %156, %162 : vector<4x2xf32>
    %c6_i32 = arith.constant 6 : i32
    %164 = arith.index_cast %c6_i32 : i32 to index
    %c0_36 = arith.constant 0 : index
    %c0_37 = arith.constant 0 : index
    %165 = vector.load %arg1[%164, %c0_36, %c0_37] : memref<8x4x2xf32, #tpu.memory_space<vmem>>, vector<1x4x2xf32>
    %166 = vector.shape_cast %165 : vector<1x4x2xf32> to vector<4x2xf32>
    %167 = vector.shape_cast %163 : vector<4x2xf32> to vector<4x1x2xf32>
    %168 = vector.shape_cast %2 : vector<4x4xf32> to vector<4x4x1xf32>
    %169 = vector.broadcast %167 : vector<4x1x2xf32> to vector<4x4x2xf32>
    %170 = vector.broadcast %168 : vector<4x4x1xf32> to vector<4x4x2xf32>
    %171 = arith.addf %169, %170 : vector<4x4x2xf32>
    %172 = vector.shape_cast %166 : vector<4x2xf32> to vector<1x4x2xf32>
    %173 = vector.broadcast %172 : vector<1x4x2xf32> to vector<4x4x2xf32>
    %174 = arith.addf %171, %173 : vector<4x4x2xf32>
    %cst_38 = arith.constant dense<0xFF800000> : vector<4x2xf32>
    %175 = vector.multi_reduction <maximumf>, %174, %cst_38 [0] : vector<4x4x2xf32> to vector<4x2xf32>
    %176 = vector.shape_cast %175 : vector<4x2xf32> to vector<1x4x2xf32>
    %177 = vector.broadcast %176 : vector<1x4x2xf32> to vector<4x4x2xf32>
    %178 = arith.subf %174, %177 : vector<4x4x2xf32>
    %179 = math.exp %178 : vector<4x4x2xf32>
    %cst_39 = arith.constant dense<0.000000e+00> : vector<4x2xf32>
    %180 = vector.multi_reduction <add>, %179, %cst_39 [0] : vector<4x4x2xf32> to vector<4x2xf32>
    %181 = math.log %180 : vector<4x2xf32>
    %182 = arith.addf %175, %181 : vector<4x2xf32>
    %c7_i32 = arith.constant 7 : i32
    %183 = arith.index_cast %c7_i32 : i32 to index
    %c0_40 = arith.constant 0 : index
    %c0_41 = arith.constant 0 : index
    %184 = vector.load %arg1[%183, %c0_40, %c0_41] : memref<8x4x2xf32, #tpu.memory_space<vmem>>, vector<1x4x2xf32>
    %185 = vector.shape_cast %184 : vector<1x4x2xf32> to vector<4x2xf32>
    %186 = vector.shape_cast %182 : vector<4x2xf32> to vector<4x1x2xf32>
    %187 = vector.shape_cast %2 : vector<4x4xf32> to vector<4x4x1xf32>
    %188 = vector.broadcast %186 : vector<4x1x2xf32> to vector<4x4x2xf32>
    %189 = vector.broadcast %187 : vector<4x4x1xf32> to vector<4x4x2xf32>
    %190 = arith.addf %188, %189 : vector<4x4x2xf32>
    %191 = vector.shape_cast %185 : vector<4x2xf32> to vector<1x4x2xf32>
    %192 = vector.broadcast %191 : vector<1x4x2xf32> to vector<4x4x2xf32>
    %193 = arith.addf %190, %192 : vector<4x4x2xf32>
    %cst_42 = arith.constant dense<0xFF800000> : vector<4x2xf32>
    %194 = vector.multi_reduction <maximumf>, %193, %cst_42 [0] : vector<4x4x2xf32> to vector<4x2xf32>
    %195 = vector.shape_cast %194 : vector<4x2xf32> to vector<1x4x2xf32>
    %196 = vector.broadcast %195 : vector<1x4x2xf32> to vector<4x4x2xf32>
    %197 = arith.subf %193, %196 : vector<4x4x2xf32>
    %198 = math.exp %197 : vector<4x4x2xf32>
    %cst_43 = arith.constant dense<0.000000e+00> : vector<4x2xf32>
    %199 = vector.multi_reduction <add>, %198, %cst_43 [0] : vector<4x4x2xf32> to vector<4x2xf32>
    %200 = math.log %199 : vector<4x2xf32>
    %201 = arith.addf %194, %200 : vector<4x2xf32>
    %c7_i32_44 = arith.constant 7 : i32
    %202 = vector.broadcast %4 : vector<4x1xf32> to vector<4x2xf32>
    %203 = arith.addf %201, %202 : vector<4x2xf32>
    %cst_45 = arith.constant dense<0xFF800000> : vector<2xf32>
    %204 = vector.multi_reduction <maximumf>, %203, %cst_45 [0] : vector<4x2xf32> to vector<2xf32>
    %205 = vector.shape_cast %204 : vector<2xf32> to vector<1x2xf32>
    %206 = vector.broadcast %205 : vector<1x2xf32> to vector<4x2xf32>
    %207 = arith.subf %203, %206 : vector<4x2xf32>
    %208 = math.exp %207 : vector<4x2xf32>
    %cst_46 = arith.constant dense<0.000000e+00> : vector<2xf32>
    %209 = vector.multi_reduction <add>, %208, %cst_46 [0] : vector<4x2xf32> to vector<2xf32>
    %210 = vector.shape_cast %209 : vector<2xf32> to vector<1x2xf32>
    %211 = math.log %210 : vector<1x2xf32>
    %212 = arith.addf %205, %211 : vector<1x2xf32>
    %c0_i32 = arith.constant 0 : i32
    %213 = arith.cmpi eq, %arg0, %c0_i32 : i32
    %214 = arith.extui %213 : i1 to i32
    %c0_i32_47 = arith.constant 0 : i32
    %215 = arith.cmpi ne, %214, %c0_i32_47 : i32
    scf.if %215 {
      %cst_55 = arith.constant 0.000000e+00 : f32
      %225 = vector.broadcast %cst_55 : f32 to vector<1x1xf32>
      %c0_56 = arith.constant 0 : index
      %c0_57 = arith.constant 0 : index
      %226 = vector.load %arg7[%c0_56, %c0_57] : memref<1x1xf32, #tpu.memory_space<vmem>>, vector<1x1xf32>
      tpu.vector_store %arg7[%c0_56, %c0_57], %225 {strides = array<i32>} : memref<1x1xf32, #tpu.memory_space<vmem>>, vector<1x1xf32>,
    } else {
    }
    %c0_48 = arith.constant 0 : index
    %c0_49 = arith.constant 0 : index
    %216 = vector.load %arg7[%c0_48, %c0_49] : memref<1x1xf32, #tpu.memory_space<vmem>>, vector<1x1xf32>
    %217 = arith.subf %64, %212 : vector<1x2xf32>
    %cst_50 = arith.constant dense<0.000000e+00> : vector<1xf32>
    %218 = vector.multi_reduction <add>, %217, %cst_50 [1] : vector<1x2xf32> to vector<1xf32>
    %219 = vector.shape_cast %218 : vector<1xf32> to vector<1x1xf32>
    %220 = arith.addf %216, %219 : vector<1x1xf32>
    %c0_51 = arith.constant 0 : index
    %c0_52 = arith.constant 0 : index
    %221 = vector.load %arg7[%c0_51, %c0_52] : memref<1x1xf32, #tpu.memory_space<vmem>>, vector<1x1xf32>
    tpu.vector_store %arg7[%c0_51, %c0_52], %220 {strides = array<i32>} : memref<1x1xf32, #tpu.memory_space<vmem>>, vector<1x1xf32>,
    %c0_i32_53 = arith.constant 0 : i32
    %222 = arith.cmpi eq, %arg0, %c0_i32_53 : i32
    %223 = arith.extui %222 : i1 to i32
    %c0_i32_54 = arith.constant 0 : i32
    %224 = arith.cmpi ne, %223, %c0_i32_54 : i32
    scf.if %224 {
      %c0_55 = arith.constant 0 : index
      %c0_56 = arith.constant 0 : index
      %225 = vector.load %arg7[%c0_55, %c0_56] : memref<1x1xf32, #tpu.memory_space<vmem>>, vector<1x1xf32>
      %cst_57 = arith.constant 0.000000e+00 : f32
      %226 = vector.broadcast %cst_57 : f32 to vector<1x1xf32>
      %227 = arith.subf %226, %225 : vector<1x1xf32>
      %228 = math.exp %225 : vector<1x1xf32>
      %cst_58 = arith.constant 1.000000e+00 : f32
      %229 = vector.broadcast %cst_58 : f32 to vector<1x1xf32>
      %230 = arith.subf %229, %228 : vector<1x1xf32>
      %231 = arith.mulf %230, %230 : vector<1x1xf32>
      %232 = arith.mulf %231, %227 : vector<1x1xf32>
      %c0_59 = arith.constant 0 : index
      %c0_60 = arith.constant 0 : index
      %233 = vector.load %arg6[%c0_59, %c0_60] : memref<1x1xf32, #tpu.memory_space<vmem>>, vector<1x1xf32>
      tpu.vector_store %arg6[%c0_59, %c0_60], %232 {strides = array<i32>} : memref<1x1xf32, #tpu.memory_space<vmem>>, vector<1x1xf32>,
    } else {
    }
    return
  }
  func.func @transform_0(%arg0: i32) -> (i32, i32, i32) {
    %c0_i32 = arith.constant 0 : i32
    %c0_i32_0 = arith.constant 0 : i32
    %c0_i32_1 = arith.constant 0 : i32
    return %c0_i32, %c0_i32_0, %arg0 : i32, i32, i32
  }
  func.func @transform_1(%arg0: i32) -> (i32, i32) {
    %c0_i32 = arith.constant 0 : i32
    %c0_i32_0 = arith.constant 0 : i32
    return %c0_i32, %arg0 : i32, i32
  }
  func.func @transform_2(%arg0: i32) -> (i32, i32) {
    %c0_i32 = arith.constant 0 : i32
    %c0_i32_0 = arith.constant 0 : i32
    %c0_i32_1 = arith.constant 0 : i32
    return %c0_i32, %c0_i32_0 : i32, i32
  }
  func.func @transform_3(%arg0: i32) -> (i32, i32) {
    %c0_i32 = arith.constant 0 : i32
    %c0_i32_0 = arith.constant 0 : i32
    %c0_i32_1 = arith.constant 0 : i32
    return %c0_i32, %c0_i32_0 : i32, i32
  }
  func.func @transform_4(%arg0: i32) -> (i32, i32) {
    %c0_i32 = arith.constant 0 : i32
    %c0_i32_0 = arith.constant 0 : i32
    %c0_i32_1 = arith.constant 0 : i32
    return %c0_i32, %c0_i32_0 : i32, i32
  }
  func.func @transform_5(%arg0: i32) -> (i32, i32) {
    %c0_i32 = arith.constant 0 : i32
    %c0_i32_0 = arith.constant 0 : i32
    %c0_i32_1 = arith.constant 0 : i32
    return %c0_i32, %c0_i32_0 : i32, i32
  }
}

</mosaic_0001>

<bundles_post_ra>
// kernel: tpu_custom_call.1
= control target key start
LH: loop header
LB: loop body
LE: loop exit
PB: predicated region body
PF: predicated region fallthrough
CT: control target
= control target key end

     0   :  { %v33_v1 = vlaneseq  ;;  %v844_v2 = vmov 0   ;;  %s1181_s0 = inlined_call_operand.vmem [shape: f32[8,4,2], index: 0, kind: input, shape index: {}]   ;;  %s1182_s1 = inlined_call_operand.vmem [shape: s32[8,2], index: 1, kind: input, shape index: {}]   ;;  %s1183_s2 = inlined_call_operand.vmem [shape: f32[4,4], index: 2, kind: input, shape index: {}]   ;;  %s1184_s3 = inlined_call_operand.vmem [shape: f32[4,1], index: 3, kind: input, shape index: {}]   ;;  %s1185_s4 = inlined_call_operand.vmem [shape: f32[4,1], index: 4, kind: input, shape index: {}]   ;;  %s1186_s5 = inlined_call_operand.hbm [shape: f32[1,1], index: 5, kind: output, shape index: {}]  }
   0x1   :  { %v31_v0 = vld [vmem:[%s1184_s3] sm:$0xf]  ;;  %732 = vset.pattern.permute.xlu0 %v844_v2 }
   0x2   :  { %10 = vsyncpa [#allocation4], 0  ;;  %235 = vperm.xlu0 %732, %v31_v0   ;;  %v883_v3 = vshrl.u32 %v33_v1, 7  ;;  %v30_v4 = vld [vmem:[%s1183_s2] sm:$0xf]  ;;  %v845_v10 = vmov 2  }
   0x3   :  { %v276_v5 = vperm.slane %v30_v4, 1  ;;  %v290_v6 = vperm.slane %v30_v4, 3  ;;  %v269_v7 = vperm.slane %v30_v4, 0  ;;  %v283_v8 = vperm.slane %v30_v4, 2  ;;  %v32_v9 = vld [vmem:[%s1185_s4] sm:$0xf] }
   0x4   :  { %734 = vset.pattern.permute.xlu1 %v883_v3  ;;  %735 = vset.pattern.permute.xlu2 %v883_v3  ;;  %v846_v11 = vmov 1   ;;  %v847_v12 = vmov 3   ;;  %v898_v13 = vld [vmem:[%s1182_s1] sm:$0xff]  ;;  %v1187_v23 = vmov 0.0   ;;  %v23_v30 = vld [vmem:[%s1181_s0 + $0x8] sm:$0xf] }
   0x5   :  { %v35_v14 = vrot.slane %v898_v13, 1  ;;  %v36_v15 = vrot.slane %v898_v13, 2  ;;  %v42_v16 = vperm.slane %v898_v13, 0  ;;  %v37_v18 = vrot.slane %v898_v13, 3  ;;  %v22_v20 = vld [vmem:[%s1181_s0 + $0x4] sm:$0xf] }
   0x6   :  { %v21_v21 = vld [vmem:[%s1181_s0] sm:$0xf]  ;;  %v38_v22 = vrot.slane %v898_v13, 4  ;;  %vm82_vm3 = vcmask 11264   ;;  %v39_v31 = vrot.slane %v898_v13, 5  ;;  %v40_v40 = vrot.slane %v898_v13, 6 }
   0x7   :  { %v43_v17 = vperm.slane %v35_v14, 0  ;;  %v44_v19 = vperm.slane %v36_v15, 0  ;;  %vm50_vm0 = vcmp.eq.s32.totalorder %v883_v3, %v42_v16  ;;  %v45_v26 = vperm.slane %v37_v18, 0  ;;  %v24_v38 = vld [vmem:[%s1181_s0 + $0xc] sm:$0xf]  ;;  %s702_s26 = sshll.u32 %s1186_s5, 4  ;;  %s703_s26 = int_to_ptr.hbm [resolvable:$true] %s702_s26 }
   0x8   :  { %v914_v24 = vsel %vm50_vm0, 1.0, %v1187_v23  ;;  %v46_v32 = vperm.slane %v38_v22, 0  ;;  %v47_v41 = vperm.slane %v39_v31, 0  ;;  %v25_v48 = vld [vmem:[%s1181_s0 + $0x10] sm:$0xf]  ;;  %v48_v50 = vperm.slane %v40_v40, 0 }
   0x9   :  { %vm51_vm1 = vcmp.eq.s32.totalorder %v883_v3, %v43_v17  ;;  %vm52_vm2 = vcmp.eq.s32.totalorder %v883_v3, %v44_v19  ;;  %v74_v27 = vmul.f32 %v914_v24, %v21_v21  ;;  %vm53_vm4 = vcmp.eq.s32.totalorder %v883_v3, %v45_v26  ;;  %v26_v53 = vld [vmem:[%s1181_s0 + $0x14] sm:$0xf]  ;;  %v719_v59 = vld [vmem:[%s1181_s0 + $0x4] sm:$0xf]  ;;  %v27_v61 = vld [vmem:[%s1181_s0 + $0x18] sm:$0xf] }
   0xa   :  { %733 = vset.pattern.permute.xlu0 %v883_v3  ;;  %v917_v25 = vsel %vm51_vm1, 1.0, %v1187_v23  ;;  %v929_v33 = vsel %vm52_vm2, 1.0, %v1187_v23  ;;  %v943_v42 = vsel %vm53_vm4, 1.0, %v1187_v23  ;;  %vm54_vm5 = vcmp.eq.s32.totalorder %v883_v3, %v46_v32 }
   0xb   :  { %v75_v28 = vmul.f32 %v917_v25, %v22_v20  ;;  %v76_v35 = vmul.f32 %v929_v33, %v23_v30  ;;  %v83_v36 = vsel %vm82_vm3, %v74_v27, 0.0  ;;  %v77_v45 = vmul.f32 %v943_v42, %v24_v38 }
   0xc   :  { %281 = vperm.xlu1 %734, %v276_v5   ;;  %295 = vperm.xlu2 %735, %v290_v6   ;;  %vm55_vm6 = vcmp.eq.s32.totalorder %v883_v3, %v47_v41  ;;  %v955_v51 = vsel %vm54_vm5, 1.0, %v1187_v23  ;;  %vm56_vm7 = vcmp.eq.s32.totalorder %v883_v3, %v48_v50  ;;  %v41_v1 = vrot.slane %v898_v13, 7 }
   0xd   :  { %v84_v37 = vsel %vm82_vm3, %v75_v28, 0.0  ;;  %v86_v46 = vsel %vm82_vm3, %v76_v35, 0.0  ;;  %v78_v54 = vmul.f32 %v955_v51, %v25_v48  ;;  %v88_v55 = vsel %vm82_vm3, %v77_v45, 0.0 }
   0xe   :  { %v85_v43 = vadd.f32 %v84_v37, %v83_v36  ;;  %v965_v58 = vsel %vm55_vm6, 1.0, %v1187_v23  ;;  %v979_v5 = vsel %vm56_vm7, 1.0, %v1187_v23  ;;  %v137_v13 = vperm.slane %v943_v42, 1 }
   0xf   :  { %v79_v62 = vmul.f32 %v965_v58, %v26_v53  ;;  %v110_v19 = vperm.slane %v917_v25, 0  ;;  %v111_v20 = vperm.slane %v929_v33, 0  ;;  %v112_v27 = vperm.slane %v943_v42, 0 }
  0x10   :  { %v87_v52 = vadd.f32 %v86_v46, %v85_v43  ;;  %v113_v32 = vperm.slane %v955_v51, 0  ;;  %v114_v40 = vperm.slane %v965_v58, 0  ;;  %v160_v43 = vperm.slane %v917_v25, 2 }
  0x11   :  { %v993_v15 = vsel %vm82_vm3, %v79_v62, 0.0  ;;  %v140_v48 = vperm.slane %v979_v5, 1  ;;  %v163_v53 = vperm.slane %v955_v51, 2  ;;  %vm673_vm9 = vcmask 0  }
  0x12   :  { %274 = vperm.xlu0 %733, %v269_v7   ;;  %v89_v63 = vadd.f32 %v88_v55, %v87_v52  ;;  %v49_v7 = vperm.slane %v41_v1, 0  ;;  %vm677_vm10 = vcmask 15360  }
  0x14   :  { %288 = vperm.xlu1 %734, %v283_v8   ;;  %736 = vset.pattern.permute.xlu2 %v844_v2  ;;  %v135_v8 = vperm.slane %v917_v25, 1  ;;  %vm57_vm8 = vcmp.eq.s32.totalorder %v883_v3, %v49_v7  ;;  %v165_v7 = vperm.slane %v979_v5, 2 }
  0x15   :  { %248 = vperm.xlu2 %736, %v32_v9   ;;  %v985_v9 = vmul.f32 %v979_v5, %v27_v61  ;;  %v1010_v38 = vsel %vm57_vm8, 1.0, %v1187_v23  ;;  %v164_v61 = vperm.slane %v965_v58, 2 }
  0x16   :  { %v141_v52 = vperm.slane %v1010_v38, 1  ;;  %v116_v1 = vperm.slane %v1010_v38, 0 }
  0x1a   :  { %739 = vset.pattern.permute.xlu0 %v845_v10 }
  0x1b   :  { %157 = vperm.xlu0 %739, %v30_v4  }
  0x1c   :  { %737 = vset.pattern.permute.xlu1 %v844_v2  ;;  %v90_v2 = vsel %vm82_vm3, %v78_v54, 0.0  ;;  %v185_v54 = vperm.slane %v917_v25, 3 }
  0x1d   :  { %107 = vperm.xlu1 %737, %v30_v4   ;;  %738 = vset.pattern.permute.xlu2 %v846_v11  ;;  %v990_v14 = vadd.f32 %v90_v2, %v89_v63  ;;  %v186_v63 = vperm.slane %v929_v33, 3 }
  0x1e   :  { %132 = vperm.xlu2 %738, %v30_v4  }
  0x23   :  { %741 = vset.pattern.permute.xlu0 %v883_v3 }
  0x25   :  { %740 = vset.pattern.permute.xlu1 %v847_v12  ;;  %v136_v12 = vperm.slane %v929_v33, 1 }
  0x26   :  { %182 = vperm.xlu1 %740, %v30_v4  }
  0x66   :  { %v922_v29 = vpop.permute.xlu2 %295 }
  0x67   :  { %1195 = vst [vmem:[#allocation6_spill] sm:$0xff] %v922_v29 }
  0x6f   :  { %v948_v47 = vpop.permute.xlu2 %248 }
  0x70   :  { %1196 = vst [vmem:[#allocation7_spill] sm:$0xff] %v948_v47 }
  0x74   :  { %v931_v34 = vpop.permute.xlu0 %235 }
  0x75   :  { %v262_v39 = vadd.f32 %v931_v34, %v21_v21  ;;  %v138_v21 = vperm.slane %v955_v51, 1 }
  0x77   :  { %v268_v44 = vrot.slane %v262_v39, 3  ;;  %v266_v56 = vrot.slane %v262_v39, 1  ;;  %v267_v0 = vrot.slane %v262_v39, 2  ;;  %v297_v16 = vperm.slane %v262_v39, 0 }
  0x78   :  { %v133_v11 = vpop.permute.xlu2 %132  ;;  %v139_v39 = vperm.slane %v965_v58, 1 }
  0x79   :  { %v300_v49 = vperm.slane %v268_v44, 0  ;;  %v298_v4 = vperm.slane %v266_v56, 0  ;;  %v299_v17 = vperm.slane %v267_v0, 0  ;;  %v142_v28 = vmul.f32 %v135_v8, %v133_v11 }
  0x7a   :  { %v143_v3 = vmul.f32 %v136_v12, %v133_v11  ;;  %v144_v35 = vmul.f32 %v137_v13, %v133_v11  ;;  %v145_v41 = vmul.f32 %v138_v21, %v133_v11  ;;  %v161_v44 = vperm.slane %v929_v33, 2 }
  0x7b   :  { %v308_v57 = vadd.f32 %v300_v49, %v922_v29  ;;  %v162_v49 = vperm.slane %v943_v42, 2  ;;  %v115_v56 = vperm.slane %v979_v5, 0  ;;  %v187_v0 = vperm.slane %v943_v42, 3 }
  0x7c   :  { %v147_v2 = vmul.f32 %v140_v48, %v133_v11  ;;  %v188_v8 = vperm.slane %v955_v51, 3  ;;  %v148_v12 = vmul.f32 %v141_v52, %v133_v11  ;;  %v166_v13 = vperm.slane %v1010_v38, 2 }
  0x7d   :  { %v981_v6 = vadd.f32 %v719_v59, %v308_v57  ;;  %v146_v57 = vmul.f32 %v139_v39, %v133_v11 }
  0x7e   :  { %v970_v60 = vpop.permute.xlu1 %281 }
  0x7f   :  { %1197 = vst [vmem:[#allocation8_spill] sm:$0xff] %v970_v60  ;;  %v306_v10 = vadd.f32 %v298_v4, %v970_v60  ;;  %v316_v22 = vsel %vm82_vm3, %v981_v6, -inf }
  0x81   :  { %v310_v30 = vadd.f32 %v719_v59, %v306_v10 }
  0x83   :  { %v314_v50 = vsel %vm82_vm3, %v310_v30, -inf }
  0x84   :  { %v995_v18 = vpop.permute.xlu0 %274 }
  0x85   :  { %v305_v26 = vadd.f32 %v297_v16, %v995_v18  ;;  %v189_v16 = vperm.slane %v965_v58, 3 }
  0x86   :  { %v1005_v31 = vpop.permute.xlu1 %288 }
  0x87   :  { %1198 = vst [vmem:[#allocation9_spill] sm:$0xff] %v1005_v31  ;;  %v309_v36 = vadd.f32 %v719_v59, %v305_v26  ;;  %v307_v37 = vadd.f32 %v299_v17, %v1005_v31 }
  0x89   :  { %v313_v45 = vsel %vm82_vm3, %v309_v36, -inf  ;;  %v311_v46 = vadd.f32 %v719_v59, %v307_v37 }
  0x8a   :  { %v317_v59 = vmax.f32 %v313_v45, %v314_v50 }
  0x8b   :  { %v315_v55 = vsel %vm82_vm3, %v311_v46, -inf }
  0x8c   :  { %v318_v62 = vmax.f32 %v315_v55, %v316_v22 }
  0x8d   :  { %v158_v4 = vpop.permute.xlu0 %157 }
  0x8e   :  { %v1031_v10 = vmax.f32 %v317_v59, %v318_v62  ;;  %v167_v21 = vmul.f32 %v160_v43, %v158_v4  ;;  %v168_v22 = vmul.f32 %v161_v44, %v158_v4  ;;  %v169_v26 = vmul.f32 %v162_v49, %v158_v4 }
  0x8f   :  { %v108_v17 = vpop.permute.xlu1 %107  ;;  %v170_v37 = vmul.f32 %v163_v53, %v158_v4  ;;  %v171_v60 = vmul.f32 %v164_v61, %v158_v4 }
  0x90   :  { %v320_v39 = vsub.f32 %v309_v36, %v1031_v10  ;;  %v321_v45 = vsub.f32 %v310_v30, %v1031_v10  ;;  %v322_v48 = vsub.f32 %v311_v46, %v1031_v10  ;;  %v323_v50 = vsub.f32 %v981_v6, %v1031_v10 }
  0x91   :  { %v117_v55 = vmul.f32 %v110_v19, %v108_v17  ;;  %v118_v11 = vmul.f32 %v111_v20, %v108_v17  ;;  %v119_v52 = vmul.f32 %v112_v27, %v108_v17  ;;  %v120_v59 = vmul.f32 %v113_v32, %v108_v17 }
  0x92   :  { %v324_v62 = vmul.f32 1.442695, %v320_v39  ;;  %v326_v23 = vmul.f32 1.442695, %v321_v45  ;;  %v328_v47 = vmul.f32 1.442695, %v322_v48  ;;  %v121_v43 = vmul.f32 %v114_v40, %v108_v17 }
  0x93   :  { %v330_v44 = vmul.f32 1.442695, %v323_v50  ;;  %v122_v49 = vmul.f32 %v115_v56, %v108_v17  ;;  %v123_v53 = vmul.f32 %v116_v1, %v108_v17  ;;  %v149_v29 = vadd.f32 %v142_v28, %v117_v55 }
  0x94   :  { %742 = vpow2.f32 %v324_v62  ;;  %v150_v36 = vadd.f32 %v143_v3, %v118_v11  ;;  %v151_v30 = vadd.f32 %v144_v35, %v119_v52  ;;  %v152_v31 = vadd.f32 %v145_v41, %v120_v59 }
  0x95   :  { %744 = vpow2.f32 %v326_v23  ;;  %v153_v46 = vadd.f32 %v146_v57, %v121_v43  ;;  %v172_v6 = vmul.f32 %v165_v7, %v158_v4  ;;  %v154_v19 = vadd.f32 %v147_v2, %v122_v49 }
  0x96   :  { %746 = vpow2.f32 %v328_v47  ;;  %v155_v20 = vadd.f32 %v148_v12, %v123_v53  ;;  %v173_v27 = vmul.f32 %v166_v13, %v158_v4  ;;  %v174_v32 = vadd.f32 %v167_v21, %v149_v29 }
  0x97   :  { %748 = vpow2.f32 %v330_v44  ;;  %v175_v39 = vadd.f32 %v168_v22, %v150_v36  ;;  %v190_v40 = vperm.slane %v979_v5, 3  ;;  %v93_v28 = vadd.f32 %v993_v15, %v990_v14  ;;  %v28_v14 = vld [vmem:[%s1181_s0 + $0x1c] sm:$0xf] }
  0x98   :  { %v176_v56 = vadd.f32 %v169_v26, %v151_v30  ;;  %v177_v3 = vadd.f32 %v170_v37, %v152_v31  ;;  %v183_v35 = vpop.permute.xlu1 %182  ;;  %v191_v23 = vperm.slane %v1010_v38, 3  ;;  %v178_v41 = vadd.f32 %v171_v60, %v153_v46 }
  0x99   :  { %v192_v57 = vmul.f32 %v185_v54, %v183_v35  ;;  %v193_v61 = vmul.f32 %v186_v63, %v183_v35  ;;  %v194_v47 = vmul.f32 %v187_v0, %v183_v35  ;;  %v179_v2 = vadd.f32 %v172_v6, %v154_v19 }
  0x9a   :  { %v743_v1 = vpop.eup %742  ;;  %v180_v4 = vadd.f32 %v173_v27, %v155_v20  ;;  %v195_v7 = vmul.f32 %v188_v8, %v183_v35  ;;  %v196_v29 = vmul.f32 %v189_v16, %v183_v35  ;;  %v197_v15 = vmul.f32 %v190_v40, %v183_v35 }
  0x9b   :  { %v745_v12 = vpop.eup %744  ;;  %v332_v13 = vsel %vm82_vm3, %v743_v1, 0.0  ;;  %v199_v31 = vadd.f32 %v192_v57, %v174_v32  ;;  %v200_v17 = vadd.f32 %v193_v61, %v175_v39  ;;  %v198_v54 = vmul.f32 %v191_v23, %v183_v35 }
  0x9c   :  { %v747_v21 = vpop.eup %746  ;;  %v333_v60 = vsel %vm82_vm3, %v745_v12, 0.0  ;;  %v201_v63 = vadd.f32 %v194_v47, %v176_v56  ;;  %v202_v0 = vadd.f32 %v195_v7, %v177_v3  ;;  %v94_v8 = vsel %vm82_vm3, %v985_v9, 0.0 }
  0x9d   :  { %v749_v22 = vpop.eup %748  ;;  %v334_v16 = vadd.f32 %v333_v60, %v332_v13  ;;  %v203_v26 = vadd.f32 %v196_v29, %v178_v41  ;;  %v335_v37 = vsel %vm82_vm3, %v747_v21, 0.0  ;;  %v81_v45 = vmul.f32 %v1010_v38, %v28_v14  ;;  %v720_v29 = vld [vmem:[%s1181_s0 + $0x8] sm:$0xf]  ;;  %v1199_v60 = vld [vmem:[#allocation8_spill] sm:$0xff] }
  0x9e   :  { %v206_v48 = vmul.f32 %v914_v24, %v199_v31  ;;  %v207_v50 = vmul.f32 %v917_v25, %v200_v17  ;;  %v204_v11 = vadd.f32 %v197_v15, %v179_v2  ;;  %v208_v52 = vmul.f32 %v929_v33, %v201_v63  ;;  %v1200_v63 = vld [vmem:[#allocation9_spill] sm:$0xff] }
  0x9f   :  { %v336_v55 = vadd.f32 %v335_v37, %v334_v16  ;;  %v209_v59 = vmul.f32 %v943_v42, %v202_v0  ;;  %v95_v62 = vadd.f32 %v94_v8, %v93_v28  ;;  %v337_v43 = vsel %vm82_vm3, %v749_v22, 0.0  ;;  %v1201_v22 = vld [vmem:[#allocation6_spill] sm:$0xff] }
  0xa0   :  { %v205_v9 = vadd.f32 %v198_v54, %v180_v4  ;;  %v213_v44 = vsel %vm82_vm3, %v206_v48, 0.0  ;;  %v210_v53 = vmul.f32 %v955_v51, %v203_v26  ;;  %v214_v36 = vsel %vm82_vm3, %v207_v50, 0.0 }
  0xa1   :  { %v338_v49 = vadd.f32 %v337_v43, %v336_v55  ;;  %v216_v30 = vsel %vm82_vm3, %v208_v52, 0.0  ;;  %v238_v25 = vmul.f32 %v914_v24, %v931_v34  ;;  %v215_v46 = vadd.f32 %v214_v36, %v213_v44 }
  0xa2   :  { %v211_v33 = vmul.f32 %v965_v58, %v204_v11  ;;  %v218_v42 = vsel %vm82_vm3, %v209_v59, 0.0  ;;  %v96_v6 = vsel %vm82_vm3, %v81_v45, 0.0  ;;  %v212_v27 = vmul.f32 %v979_v5, %v205_v9 }
  0xa3   :  { %750 = vlog2.f32 %v338_v49  ;;  %v217_v19 = vadd.f32 %v216_v30, %v215_v46  ;;  %v97_v20 = vadd.f32 %v96_v6, %v95_v62  ;;  %v220_v51 = vsel %vm82_vm3, %v210_v53, 0.0 }
  0xa4   :  { %v239_v32 = vsel %vm82_vm3, %v238_v25, 0.0  ;;  %v222_v24 = vsel %vm82_vm3, %v211_v33, 0.0  ;;  %v224_v3 = vsel %vm82_vm3, %v212_v27, 0.0 }
  0xa5   :  { %v219_v39 = vadd.f32 %v218_v42, %v217_v19  ;;  %v98_v40 = vsel %vm82_vm3, %v97_v20, 0.0  ;;  %v240_v56 = vrot.slane %v239_v32, 4 }
  0xa6   :  { %v99_v34 = vrot.slane %v98_v40, 4 }
  0xa7   :  { %v221_v28 = vadd.f32 %v220_v51, %v219_v39  ;;  %v241_v61 = vadd.f32 %v240_v56, %v239_v32 }
  0xa8   :  { %v100_v35 = vadd.f32 %v99_v34, %v98_v40 }
  0xa9   :  { %v751_v58 = vpop.eup %750  ;;  %v223_v41 = vadd.f32 %v222_v24, %v221_v28  ;;  %v242_v17 = vrot.slane %v241_v61, 2 }
  0xaa   :  { %v340_v23 = vmul.f32 0.6931472, %v751_v58  ;;  %v101_v47 = vrot.slane %v100_v35, 2 }
  0xab   :  { %v225_v57 = vadd.f32 %v224_v3, %v223_v41  ;;  %v243_v50 = vadd.f32 %v242_v17, %v241_v61 }
  0xac   :  { %v341_v5 = vadd.f32 %v340_v23, %v1031_v10  ;;  %v102_v10 = vadd.f32 %v101_v47, %v100_v35 }
  0xad   :  { %v226_v12 = vsel %vm82_vm3, %v225_v57, 0.0  ;;  %v244_v30 = vrot.slane %v243_v50, 1 }
  0xae   :  { %v345_v1 = vrot.slane %v341_v5, 1  ;;  %v346_v2 = vrot.slane %v341_v5, 2  ;;  %v347_v4 = vrot.slane %v341_v5, 3  ;;  %v348_v7 = vperm.slane %v341_v5, 0 }
  0xaf   :  { %v227_v21 = vrot.slane %v226_v12, 4  ;;  %v103_v55 = vrot.slane %v102_v10, 1  ;;  %v245_v39 = vadd.f32 %v244_v30, %v243_v50 }
  0xb0   :  { %v349_v13 = vperm.slane %v345_v1, 0  ;;  %v350_v14 = vperm.slane %v346_v2, 0  ;;  %v351_v15 = vperm.slane %v347_v4, 0  ;;  %v356_v31 = vadd.f32 %v348_v7, %v995_v18 }
  0xb1   :  { %v228_v26 = vadd.f32 %v227_v21, %v226_v12  ;;  %v104_v25 = vadd.f32 %v103_v55, %v102_v10 }
  0xb2   :  { %v357_v54 = vadd.f32 %v349_v13, %v1199_v60  ;;  %v358_v0 = vadd.f32 %v350_v14, %v1200_v63  ;;  %v359_v8 = vadd.f32 %v351_v15, %v1201_v22  ;;  %v360_v16 = vadd.f32 %v720_v29, %v356_v31  ;;  %v721_v13 = vld [vmem:[%s1181_s0 + $0xc] sm:$0xf] }
  0xb3   :  { %v229_v11 = vrot.slane %v228_v26, 2 }
  0xb4   :  { %v361_v37 = vadd.f32 %v720_v29, %v357_v54  ;;  %v362_v45 = vadd.f32 %v720_v29, %v358_v0  ;;  %v363_v48 = vadd.f32 %v720_v29, %v359_v8  ;;  %v364_v52 = vsel %vm82_vm3, %v360_v16, -inf }
  0xb5   :  { %v230_v49 = vadd.f32 %v229_v11, %v228_v26 }
  0xb6   :  { %v365_v59 = vsel %vm82_vm3, %v361_v37, -inf  ;;  %v366_v62 = vsel %vm82_vm3, %v362_v45, -inf  ;;  %v367_v43 = vsel %vm82_vm3, %v363_v48, -inf }
  0xb7   :  { %v368_v9 = vmax.f32 %v364_v52, %v365_v59  ;;  %v369_v44 = vmax.f32 %v366_v62, %v367_v43  ;;  %v231_v36 = vrot.slane %v230_v49, 1 }
  0xb9   :  { %v370_v53 = vmax.f32 %v368_v9, %v369_v44  ;;  %v232_v19 = vadd.f32 %v231_v36, %v230_v49 }
  0xbb   :  { %v371_v46 = vsub.f32 %v360_v16, %v370_v53  ;;  %v372_v33 = vsub.f32 %v361_v37, %v370_v53  ;;  %v373_v42 = vsub.f32 %v362_v45, %v370_v53  ;;  %v374_v6 = vsub.f32 %v363_v48, %v370_v53 }
  0xbc   :  { %v259_v40 = vadd.f32 %v232_v19, %v104_v25 }
  0xbd   :  { %v375_v20 = vmul.f32 1.442695, %v371_v46  ;;  %v377_v27 = vmul.f32 1.442695, %v372_v33  ;;  %v379_v51 = vmul.f32 1.442695, %v373_v42 }
  0xbe   :  { %v381_v32 = vmul.f32 1.442695, %v374_v6  ;;  %v1086_v24 = vadd.f32 %v259_v40, %v245_v39 }
  0xbf   :  { %752 = vpow2.f32 %v375_v20 }
  0xc0   :  { %754 = vpow2.f32 %v377_v27 }
  0xc1   :  { %756 = vpow2.f32 %v379_v51 }
  0xc2   :  { %758 = vpow2.f32 %v381_v32 }
  0xc5   :  { %v753_v34 = vpop.eup %752 }
  0xc6   :  { %v755_v28 = vpop.eup %754  ;;  %v383_v58 = vsel %vm82_vm3, %v753_v34, 0.0 }
  0xc7   :  { %v757_v56 = vpop.eup %756  ;;  %v384_v3 = vsel %vm82_vm3, %v755_v28, 0.0 }
  0xc8   :  { %v759_v35 = vpop.eup %758  ;;  %v385_v23 = vadd.f32 %v384_v3, %v383_v58  ;;  %v386_v41 = vsel %vm82_vm3, %v757_v56, 0.0 }
  0xc9   :  { %v388_v57 = vsel %vm82_vm3, %v759_v35, 0.0  ;;  %v722_v35 = vld [vmem:[%s1181_s0 + $0x10] sm:$0xf] }
  0xca   :  { %v387_v5 = vadd.f32 %v386_v41, %v385_v23 }
  0xcc   :  { %v389_v61 = vadd.f32 %v388_v57, %v387_v5 }
  0xce   :  { %760 = vlog2.f32 %v389_v61 }
  0xd4   :  { %v761_v47 = vpop.eup %760 }
  0xd5   :  { %v391_v1 = vmul.f32 0.6931472, %v761_v47 }
  0xd7   :  { %v392_v2 = vadd.f32 %v391_v1, %v370_v53 }
  0xd9   :  { %v396_v4 = vrot.slane %v392_v2, 1  ;;  %v397_v7 = vrot.slane %v392_v2, 2  ;;  %v398_v29 = vrot.slane %v392_v2, 3  ;;  %v399_v12 = vperm.slane %v392_v2, 0 }
  0xdb   :  { %v400_v14 = vperm.slane %v396_v4, 0  ;;  %v401_v15 = vperm.slane %v397_v7, 0  ;;  %v402_v31 = vperm.slane %v398_v29, 0  ;;  %v407_v17 = vadd.f32 %v399_v12, %v995_v18 }
  0xdd   :  { %v408_v10 = vadd.f32 %v400_v14, %v1199_v60  ;;  %v409_v21 = vadd.f32 %v401_v15, %v1200_v63  ;;  %v410_v54 = vadd.f32 %v402_v31, %v1201_v22  ;;  %v411_v0 = vadd.f32 %v721_v13, %v407_v17 }
  0xdf   :  { %v412_v8 = vadd.f32 %v721_v13, %v408_v10  ;;  %v413_v16 = vadd.f32 %v721_v13, %v409_v21  ;;  %v414_v26 = vadd.f32 %v721_v13, %v410_v54  ;;  %v415_v37 = vsel %vm82_vm3, %v411_v0, -inf }
  0xe1   :  { %v416_v45 = vsel %vm82_vm3, %v412_v8, -inf  ;;  %v417_v48 = vsel %vm82_vm3, %v413_v16, -inf  ;;  %v418_v50 = vsel %vm82_vm3, %v414_v26, -inf }
  0xe2   :  { %v419_v55 = vmax.f32 %v415_v37, %v416_v45  ;;  %v420_v11 = vmax.f32 %v417_v48, %v418_v50 }
  0xe4   :  { %v421_v52 = vmax.f32 %v419_v55, %v420_v11 }
  0xe6   :  { %v422_v59 = vsub.f32 %v411_v0, %v421_v52  ;;  %v423_v62 = vsub.f32 %v412_v8, %v421_v52  ;;  %v424_v43 = vsub.f32 %v413_v16, %v421_v52  ;;  %v425_v9 = vsub.f32 %v414_v26, %v421_v52 }
  0xe8   :  { %v426_v44 = vmul.f32 1.442695, %v422_v59  ;;  %v428_v49 = vmul.f32 1.442695, %v423_v62  ;;  %v430_v53 = vmul.f32 1.442695, %v424_v43 }
  0xe9   :  { %v432_v36 = vmul.f32 1.442695, %v425_v9 }
  0xea   :  { %762 = vpow2.f32 %v426_v44 }
  0xeb   :  { %764 = vpow2.f32 %v428_v49 }
  0xec   :  { %766 = vpow2.f32 %v430_v53 }
  0xed   :  { %768 = vpow2.f32 %v432_v36 }
  0xf0   :  { %v763_v30 = vpop.eup %762 }
  0xf1   :  { %v765_v25 = vpop.eup %764  ;;  %v434_v46 = vsel %vm82_vm3, %v763_v30, 0.0 }
  0xf2   :  { %v767_v33 = vpop.eup %766  ;;  %v435_v42 = vsel %vm82_vm3, %v765_v25, 0.0 }
  0xf3   :  { %v769_v6 = vpop.eup %768  ;;  %v436_v19 = vadd.f32 %v435_v42, %v434_v46  ;;  %v437_v20 = vsel %vm82_vm3, %v767_v33, 0.0 }
  0xf4   :  { %v439_v51 = vsel %vm82_vm3, %v769_v6, 0.0  ;;  %v723_v6 = vld [vmem:[%s1181_s0 + $0x14] sm:$0xf] }
  0xf5   :  { %v438_v27 = vadd.f32 %v437_v20, %v436_v19 }
  0xf7   :  { %v440_v32 = vadd.f32 %v439_v51, %v438_v27 }
  0xf9   :  { %770 = vlog2.f32 %v440_v32 }
  0xff   :  { %v771_v39 = vpop.eup %770 }
 0x100   :  { %v442_v40 = vmul.f32 0.6931472, %v771_v39 }
 0x102   :  { %v443_v34 = vadd.f32 %v442_v40, %v421_v52 }
 0x104   :  { %v447_v28 = vrot.slane %v443_v34, 1  ;;  %v448_v58 = vrot.slane %v443_v34, 2  ;;  %v449_v56 = vrot.slane %v443_v34, 3  ;;  %v450_v3 = vperm.slane %v443_v34, 0 }
 0x106   :  { %v451_v23 = vperm.slane %v447_v28, 0  ;;  %v452_v41 = vperm.slane %v448_v58, 0  ;;  %v453_v5 = vperm.slane %v449_v56, 0  ;;  %v458_v57 = vadd.f32 %v450_v3, %v995_v18 }
 0x108   :  { %v459_v61 = vadd.f32 %v451_v23, %v1199_v60  ;;  %v460_v47 = vadd.f32 %v452_v41, %v1200_v63  ;;  %v461_v1 = vadd.f32 %v453_v5, %v1201_v22  ;;  %v462_v2 = vadd.f32 %v722_v35, %v458_v57 }
 0x10a   :  { %v463_v4 = vadd.f32 %v722_v35, %v459_v61  ;;  %v464_v7 = vadd.f32 %v722_v35, %v460_v47  ;;  %v465_v29 = vadd.f32 %v722_v35, %v461_v1  ;;  %v466_v12 = vsel %vm82_vm3, %v462_v2, -inf }
 0x10c   :  { %v467_v13 = vsel %vm82_vm3, %v463_v4, -inf  ;;  %v468_v14 = vsel %vm82_vm3, %v464_v7, -inf  ;;  %v469_v15 = vsel %vm82_vm3, %v465_v29, -inf }
 0x10d   :  { %v470_v31 = vmax.f32 %v466_v12, %v467_v13  ;;  %v471_v17 = vmax.f32 %v468_v14, %v469_v15 }
 0x10f   :  { %v472_v10 = vmax.f32 %v470_v31, %v471_v17 }
 0x111   :  { %v473_v21 = vsub.f32 %v462_v2, %v472_v10  ;;  %v474_v54 = vsub.f32 %v463_v4, %v472_v10  ;;  %v475_v0 = vsub.f32 %v464_v7, %v472_v10  ;;  %v476_v8 = vsub.f32 %v465_v29, %v472_v10 }
 0x113   :  { %v477_v16 = vmul.f32 1.442695, %v473_v21  ;;  %v479_v26 = vmul.f32 1.442695, %v474_v54  ;;  %v481_v37 = vmul.f32 1.442695, %v475_v0 }
 0x114   :  { %v483_v45 = vmul.f32 1.442695, %v476_v8 }
 0x115   :  { %772 = vpow2.f32 %v477_v16 }
 0x116   :  { %774 = vpow2.f32 %v479_v26 }
 0x117   :  { %776 = vpow2.f32 %v481_v37 }
 0x118   :  { %778 = vpow2.f32 %v483_v45 }
 0x11b   :  { %v773_v48 = vpop.eup %772 }
 0x11c   :  { %v775_v50 = vpop.eup %774  ;;  %v485_v55 = vsel %vm82_vm3, %v773_v48, 0.0 }
 0x11d   :  { %v777_v11 = vpop.eup %776  ;;  %v486_v52 = vsel %vm82_vm3, %v775_v50, 0.0 }
 0x11e   :  { %v779_v59 = vpop.eup %778  ;;  %v487_v62 = vadd.f32 %v486_v52, %v485_v55  ;;  %v488_v43 = vsel %vm82_vm3, %v777_v11, 0.0 }
 0x11f   :  { %v490_v44 = vsel %vm82_vm3, %v779_v59, 0.0  ;;  %v724_v59 = vld [vmem:[%s1181_s0 + $0x18] sm:$0xf] }
 0x120   :  { %v489_v9 = vadd.f32 %v488_v43, %v487_v62 }
 0x122   :  { %v491_v49 = vadd.f32 %v490_v44, %v489_v9 }
 0x124   :  { %780 = vlog2.f32 %v491_v49 }
 0x12a   :  { %v781_v53 = vpop.eup %780 }
 0x12b   :  { %v493_v36 = vmul.f32 0.6931472, %v781_v53 }
 0x12d   :  { %v494_v30 = vadd.f32 %v493_v36, %v472_v10 }
 0x12f   :  { %v498_v25 = vrot.slane %v494_v30, 1  ;;  %v499_v46 = vrot.slane %v494_v30, 2  ;;  %v500_v33 = vrot.slane %v494_v30, 3  ;;  %v501_v42 = vperm.slane %v494_v30, 0 }
 0x131   :  { %v502_v19 = vperm.slane %v498_v25, 0  ;;  %v503_v20 = vperm.slane %v499_v46, 0  ;;  %v504_v27 = vperm.slane %v500_v33, 0  ;;  %v509_v51 = vadd.f32 %v501_v42, %v995_v18 }
 0x133   :  { %v510_v32 = vadd.f32 %v502_v19, %v1199_v60  ;;  %v511_v39 = vadd.f32 %v503_v20, %v1200_v63  ;;  %v512_v40 = vadd.f32 %v504_v27, %v1201_v22  ;;  %v513_v34 = vadd.f32 %v723_v6, %v509_v51 }
 0x135   :  { %v514_v28 = vadd.f32 %v723_v6, %v510_v32  ;;  %v515_v58 = vadd.f32 %v723_v6, %v511_v39  ;;  %v516_v56 = vadd.f32 %v723_v6, %v512_v40  ;;  %v517_v3 = vsel %vm82_vm3, %v513_v34, -inf }
 0x137   :  { %v518_v35 = vsel %vm82_vm3, %v514_v28, -inf  ;;  %v519_v23 = vsel %vm82_vm3, %v515_v58, -inf  ;;  %v520_v41 = vsel %vm82_vm3, %v516_v56, -inf }
 0x138   :  { %v521_v5 = vmax.f32 %v517_v3, %v518_v35  ;;  %v522_v57 = vmax.f32 %v519_v23, %v520_v41 }
 0x13a   :  { %v523_v61 = vmax.f32 %v521_v5, %v522_v57 }
 0x13c   :  { %v524_v47 = vsub.f32 %v513_v34, %v523_v61  ;;  %v525_v1 = vsub.f32 %v514_v28, %v523_v61  ;;  %v526_v2 = vsub.f32 %v515_v58, %v523_v61  ;;  %v527_v4 = vsub.f32 %v516_v56, %v523_v61 }
 0x13e   :  { %v528_v7 = vmul.f32 1.442695, %v524_v47  ;;  %v530_v29 = vmul.f32 1.442695, %v525_v1  ;;  %v532_v12 = vmul.f32 1.442695, %v526_v2 }
 0x13f   :  { %v534_v13 = vmul.f32 1.442695, %v527_v4 }
 0x140   :  { %782 = vpow2.f32 %v528_v7 }
 0x141   :  { %784 = vpow2.f32 %v530_v29 }
 0x142   :  { %786 = vpow2.f32 %v532_v12 }
 0x143   :  { %788 = vpow2.f32 %v534_v13 }
 0x146   :  { %v783_v14 = vpop.eup %782 }
 0x147   :  { %v785_v15 = vpop.eup %784  ;;  %v536_v31 = vsel %vm82_vm3, %v783_v14, 0.0 }
 0x148   :  { %v787_v17 = vpop.eup %786  ;;  %v537_v10 = vsel %vm82_vm3, %v785_v15, 0.0 }
 0x149   :  { %v789_v21 = vpop.eup %788  ;;  %v538_v54 = vadd.f32 %v537_v10, %v536_v31  ;;  %v539_v0 = vsel %vm82_vm3, %v787_v17, 0.0 }
 0x14a   :  { %v541_v16 = vsel %vm82_vm3, %v789_v21, 0.0  ;;  %v725_v21 = vld [vmem:[%s1181_s0 + $0x1c] sm:$0xf]  ;;  %s849_s0 = smov [#allocation3]  }
 0x14b   :  { %v540_v8 = vadd.f32 %v539_v0, %v538_v54  ;;  %s700_s24 = sshll.u32 %s849_s0, 4  ;;  %s701_s24 = int_to_ptr.vmem [resolvable:$true] %s700_s24 }
 0x14d   :  { %v542_v26 = vadd.f32 %v541_v16, %v540_v8 }
 0x14f   :  { %790 = vlog2.f32 %v542_v26 }
 0x155   :  { %v791_v37 = vpop.eup %790 }
 0x156   :  { %v544_v45 = vmul.f32 0.6931472, %v791_v37 }
 0x158   :  { %v545_v48 = vadd.f32 %v544_v45, %v523_v61 }
 0x15a   :  { %v549_v50 = vrot.slane %v545_v48, 1  ;;  %v550_v55 = vrot.slane %v545_v48, 2  ;;  %v551_v11 = vrot.slane %v545_v48, 3  ;;  %v552_v52 = vperm.slane %v545_v48, 0 }
 0x15c   :  { %v553_v62 = vperm.slane %v549_v50, 0  ;;  %v554_v43 = vperm.slane %v550_v55, 0  ;;  %v555_v9 = vperm.slane %v551_v11, 0  ;;  %v560_v44 = vadd.f32 %v552_v52, %v995_v18 }
 0x15e   :  { %v561_v49 = vadd.f32 %v553_v62, %v1199_v60  ;;  %v562_v53 = vadd.f32 %v554_v43, %v1200_v63  ;;  %v563_v36 = vadd.f32 %v555_v9, %v1201_v22  ;;  %v564_v30 = vadd.f32 %v724_v59, %v560_v44 }
 0x160   :  { %v565_v25 = vadd.f32 %v724_v59, %v561_v49  ;;  %v566_v46 = vadd.f32 %v724_v59, %v562_v53  ;;  %v567_v33 = vadd.f32 %v724_v59, %v563_v36  ;;  %v568_v42 = vsel %vm82_vm3, %v564_v30, -inf }
 0x162   :  { %v569_v6 = vsel %vm82_vm3, %v565_v25, -inf  ;;  %v570_v19 = vsel %vm82_vm3, %v566_v46, -inf  ;;  %v571_v20 = vsel %vm82_vm3, %v567_v33, -inf }
 0x163   :  { %v572_v27 = vmax.f32 %v568_v42, %v569_v6  ;;  %v573_v51 = vmax.f32 %v570_v19, %v571_v20 }
 0x165   :  { %v574_v32 = vmax.f32 %v572_v27, %v573_v51 }
 0x167   :  { %v575_v39 = vsub.f32 %v564_v30, %v574_v32  ;;  %v576_v40 = vsub.f32 %v565_v25, %v574_v32  ;;  %v577_v34 = vsub.f32 %v566_v46, %v574_v32  ;;  %v578_v28 = vsub.f32 %v567_v33, %v574_v32 }
 0x169   :  { %v579_v58 = vmul.f32 1.442695, %v575_v39  ;;  %v581_v56 = vmul.f32 1.442695, %v576_v40  ;;  %v583_v3 = vmul.f32 1.442695, %v577_v34 }
 0x16a   :  { %v585_v35 = vmul.f32 1.442695, %v578_v28 }
 0x16b   :  { %792 = vpow2.f32 %v579_v58 }
 0x16c   :  { %794 = vpow2.f32 %v581_v56  ;;  %v1202_v56 = vld [vmem:[#allocation7_spill] sm:$0xff] }
 0x16d   :  { %796 = vpow2.f32 %v583_v3 }
 0x16e   :  { %798 = vpow2.f32 %v585_v35 }
 0x171   :  { %v793_v23 = vpop.eup %792 }
 0x172   :  { %v795_v41 = vpop.eup %794  ;;  %v587_v5 = vsel %vm82_vm3, %v793_v23, 0.0 }
 0x173   :  { %v797_v57 = vpop.eup %796  ;;  %v588_v61 = vsel %vm82_vm3, %v795_v41, 0.0 }
 0x174   :  { %v799_v47 = vpop.eup %798  ;;  %v589_v1 = vadd.f32 %v588_v61, %v587_v5  ;;  %v590_v2 = vsel %vm82_vm3, %v797_v57, 0.0 }
 0x175   :  { %v592_v7 = vsel %vm82_vm3, %v799_v47, 0.0 }
 0x176   :  { %v591_v4 = vadd.f32 %v590_v2, %v589_v1  ;;  %v251_v2 = vmul.f32 %v1010_v38, %v1202_v56 }
 0x178   :  { %v593_v29 = vadd.f32 %v592_v7, %v591_v4  ;;  %v252_v7 = vsel %vm82_vm3, %v251_v2, 0.0 }
 0x17a   :  { %800 = vlog2.f32 %v593_v29  ;;  %v1203_v29 = vmov 0.0  }
 0x17b   :  { %674 = vst.msk [vmem:[#allocation2] sm:$0x1] %vm673_vm9, %v1203_v29 }
 0x180   :  { %v801_v12 = vpop.eup %800 }
 0x181   :  { %v595_v13 = vmul.f32 0.6931472, %v801_v12  ;;  %v253_v12 = vrot.slane %v252_v7, 4 }
 0x183   :  { %v596_v14 = vadd.f32 %v595_v13, %v574_v32 }
 0x185   :  { %v601_v15 = vrot.slane %v596_v14, 2  ;;  %v600_v31 = vrot.slane %v596_v14, 1  ;;  %v602_v17 = vrot.slane %v596_v14, 3  ;;  %v603_v10 = vperm.slane %v596_v14, 0 }
 0x187   :  { %v605_v54 = vperm.slane %v601_v15, 0  ;;  %v604_v0 = vperm.slane %v600_v31, 0  ;;  %v606_v8 = vperm.slane %v602_v17, 0  ;;  %v611_v16 = vadd.f32 %v603_v10, %v995_v18 }
 0x188   :  { %v254_v31 = vadd.f32 %v253_v12, %v252_v7 }
 0x189   :  { %v613_v26 = vadd.f32 %v605_v54, %v1200_v63  ;;  %v612_v37 = vadd.f32 %v604_v0, %v1199_v60  ;;  %v614_v45 = vadd.f32 %v606_v8, %v1201_v22  ;;  %v615_v48 = vadd.f32 %v725_v21, %v611_v16 }
 0x18b   :  { %v617_v50 = vadd.f32 %v725_v21, %v613_v26  ;;  %v616_v55 = vadd.f32 %v725_v21, %v612_v37  ;;  %v618_v11 = vadd.f32 %v725_v21, %v614_v45  ;;  %v619_v52 = vsel %vm82_vm3, %v615_v48, -inf }
 0x18c   :  { %v255_v21 = vrot.slane %v254_v31, 2 }
 0x18d   :  { %v620_v59 = vsel %vm82_vm3, %v616_v55, -inf  ;;  %v621_v62 = vsel %vm82_vm3, %v617_v50, -inf  ;;  %v622_v43 = vsel %vm82_vm3, %v618_v11, -inf }
 0x18e   :  { %v623_v9 = vmax.f32 %v619_v52, %v620_v59  ;;  %v624_v18 = vmax.f32 %v621_v62, %v622_v43  ;;  %v256_v38 = vadd.f32 %v255_v21, %v254_v31  ;;  %v675_v52 = vld [vmem:[#allocation2] sm:$0x1] }
 0x190   :  { %v625_v44 = vmax.f32 %v623_v9, %v624_v18  ;;  %v257_v16 = vrot.slane %v256_v38, 1 }
 0x192   :  { %v626_v63 = vsub.f32 %v615_v48, %v625_v44  ;;  %v627_v49 = vsub.f32 %v616_v55, %v625_v44  ;;  %v628_v60 = vsub.f32 %v617_v50, %v625_v44  ;;  %v629_v53 = vsub.f32 %v618_v11, %v625_v44 }
 0x193   :  { %v258_v26 = vadd.f32 %v257_v16, %v256_v38 }
 0x194   :  { %v630_v22 = vmul.f32 1.442695, %v626_v63  ;;  %v632_v36 = vmul.f32 1.442695, %v627_v49  ;;  %v634_v30 = vmul.f32 1.442695, %v628_v60 }
 0x195   :  { %v636_v25 = vmul.f32 1.442695, %v629_v53  ;;  %v261_v48 = vadd.f32 %v1086_v24, %v258_v26 }
 0x196   :  { %802 = vpow2.f32 %v630_v22 }
 0x197   :  { %804 = vpow2.f32 %v632_v36 }
 0x198   :  { %806 = vpow2.f32 %v634_v30 }
 0x199   :  { %808 = vpow2.f32 %v636_v25 }
 0x19c   :  { %v803_v46 = vpop.eup %802 }
 0x19d   :  { %v805_v33 = vpop.eup %804  ;;  %v638_v42 = vsel %vm82_vm3, %v803_v46, 0.0 }
 0x19e   :  { %v807_v6 = vpop.eup %806  ;;  %v639_v19 = vsel %vm82_vm3, %v805_v33, 0.0 }
 0x19f   :  { %v809_v20 = vpop.eup %808  ;;  %v640_v27 = vadd.f32 %v639_v19, %v638_v42  ;;  %v641_v51 = vsel %vm82_vm3, %v807_v6, 0.0 }
 0x1a0   :  { %v643_v39 = vsel %vm82_vm3, %v809_v20, 0.0 }
 0x1a1   :  { %v642_v32 = vadd.f32 %v641_v51, %v640_v27 }
 0x1a3   :  { %v644_v40 = vadd.f32 %v643_v39, %v642_v32 }
 0x1a5   :  { %810 = vlog2.f32 %v644_v40 }
 0x1ab   :  { %v811_v34 = vpop.eup %810 }
 0x1ac   :  { %v646_v28 = vmul.f32 0.6931472, %v811_v34 }
 0x1ae   :  { %v647_v58 = vadd.f32 %v646_v28, %v625_v44 }
 0x1b0   :  { %v648_v3 = vadd.f32 %v647_v58, %v1202_v56 }
 0x1b2   :  { %v649_v35 = vsel %vm82_vm3, %v648_v3, -inf }
 0x1b3   :  { %v650_v23 = vrot.slane %v649_v35, 4 }
 0x1b5   :  { %v651_v41 = vmax.f32 %v649_v35, %v650_v23 }
 0x1b7   :  { %v652_v5 = vrot.slane %v651_v41, 2 }
 0x1b9   :  { %v653_v57 = vmax.f32 %v651_v41, %v652_v5 }
 0x1bb   :  { %v654_v61 = vrot.slane %v653_v57, 1 }
 0x1bd   :  { %v655_v47 = vmax.f32 %v653_v57, %v654_v61 }
 0x1bf   :  { %v656_v1 = vsub.f32 %v648_v3, %v655_v47 }
 0x1c1   :  { %v657_v4 = vmul.f32 1.442695, %v656_v1 }
 0x1c3   :  { %812 = vpow2.f32 %v657_v4 }
 0x1c9   :  { %v813_v13 = vpop.eup %812 }
 0x1ca   :  { %v659_v14 = vsel %vm82_vm3, %v813_v13, 0.0 }
 0x1cb   :  { %v660_v15 = vrot.slane %v659_v14, 4 }
 0x1cd   :  { %v661_v17 = vadd.f32 %v660_v15, %v659_v14 }
 0x1cf   :  { %v662_v10 = vrot.slane %v661_v17, 2 }
 0x1d1   :  { %v663_v54 = vadd.f32 %v662_v10, %v661_v17 }
 0x1d3   :  { %v664_v0 = vrot.slane %v663_v54, 1 }
 0x1d5   :  { %v665_v8 = vadd.f32 %v664_v0, %v663_v54 }
 0x1d7   :  { %814 = vlog2.f32 %v665_v8 }
 0x1dd   :  { %v815_v37 = vpop.eup %814 }
 0x1de   :  { %v667_v45 = vmul.f32 0.6931472, %v815_v37 }
 0x1e0   :  { %v668_v50 = vadd.f32 %v667_v45, %v655_v47 }
 0x1e2   :  { %v676_v55 = vsub.f32 %v261_v48, %v668_v50 }
 0x1e4   :  { %v678_v11 = vsel %vm677_vm10, %v676_v55, 0.0 }
 0x1e5   :  { %679 = vadd.xlane.f32.xlu2 %v678_v11 }
 0x258   :  { %v680_v59 = vpop.xlane.xlu2 %679 }
 0x259   :  { %v681_v62 = vadd.f32 %v680_v59, %v675_v52 }
 0x25b   :  { %683 = vst.msk [vmem:[#allocation2] sm:$0x1] %vm673_vm9, %v681_v62 }
 0x262   :  { %v687_v43 = vld [vmem:[#allocation2] sm:$0x1] }
 0x263   :  { %v689_v9 = vmul.f32 1.442695, %v687_v43  ;;  %v688_v24 = vsub.f32 0.0, %v687_v43 }
 0x265   :  { %816 = vpow2.f32 %v689_v9 }
 0x26b   :  { %v817_v18 = vpop.eup %816 }
 0x26c   :  { %v691_v44 = vsub.f32 1.0, %v817_v18 }
 0x26e   :  { %v692_v63 = vmul.f32 %v691_v44, %v691_v44 }
 0x270   :  { %v693_v49 = vmul.f32 %v692_v63, %v688_v24 }
 0x272   :  { %694 = vst.msk [vmem:[#allocation3] sm:$0x1] %vm673_vm9, %v693_v49 }
 0x273   :  { %705 = dma.vmem_to_hbm [thread:$0]  %s701_s24, 16, %s703_s26, [#allocation4]  }
 0x274   :  { %842 = dma.done.wait [#allocation4], 16  }
 0x275   :  { %843 = vsyncadd [#allocation4], 4294967280 }
 0x276   :  { %710 = vsyncpa [#allocation4], 1 }

</bundles_post_ra>
